<compile_context>
chip_gen: v7x
topology: tpu7x:2x2x1
jax: 0.10.0
libtpu: 0.0.40
codegen_flags: <defaults>
</compile_context>

<pallas_src>
import jax
import jax.numpy as jnp
from jax.experimental import pallas as pl
from jax.experimental.pallas import tpu as pltpu

BETA = 0.95          # leak factor of snn.Leaky
THRESHOLD = 1.0      # snn.Leaky default threshold
LANE = 128
SUBLANE = 8
BATCH_TILE_CAP = 2048


def _round_up(x, m):
    return (x + m - 1) // m * m


def _batch_layout(batch, cap=BATCH_TILE_CAP):
    """Return (B_pad, TB): TB is the batch tile (multiple of 8, <= cap) and B_pad
    is the padded batch, an exact multiple of TB (so every block is full)."""
    b = _round_up(batch, SUBLANE)
    n_tiles = -(-b // cap)                     # >= 2 tiles once b > cap (v7x megacore)
    tb = _round_up(-(-b // n_tiles), SUBLANE)
    return n_tiles * tb, tb


# ---------------------------------------------------------------------------
# Kernel
# ---------------------------------------------------------------------------
def critic_kernel(x_ref, mem_in_ref, w1_ref, b1_ref, w2_ref, b2_ref,
                  wq_ref, bq_ref, q_ref, mem_ref):
    t = pl.program_id(1)

    # First timestep of this batch tile: load the carried membrane into the
    # VMEM-resident output block (its block index is constant along t, so it is
    # DMA'd in once and written back to HBM once, after the last timestep).
    @pl.when(t == 0)
    def _():
        mem_ref[...] = mem_in_ref[...]

    mem = mem_ref[...]

    # fc1 on the pre-concatenated, lane-padded [state | action | 0...] block.
    z1 = jnp.dot(x_ref[0], w1_ref[...],
                 preferred_element_type=jnp.float32) + b1_ref[...]

    # snn.Leaky (reset-by-subtraction): reset from previous membrane, integrate, fire.
    reset = (mem > THRESHOLD).astype(jnp.float32)
    mem_new = BETA * mem + z1 - reset * THRESHOLD
    spk = (mem_new > THRESHOLD).astype(jnp.float32)        # binary spikes

    # fc2 + ReLU, then the q head (128 lane-padded output columns; logical q is
    # column 0, padded columns have exactly-zero weights/biases).
    h2 = jnp.maximum(
        jnp.dot(spk, w2_ref[...], preferred_element_type=jnp.float32) + b2_ref[...],
        0.0)
    q = jnp.dot(h2, wq_ref[...], preferred_element_type=jnp.float32) + bq_ref[...]

    q_ref[0] = q
    mem_ref[...] = mem_new


# ---------------------------------------------------------------------------
# Wrapper
# ---------------------------------------------------------------------------
def init_mem(batch, fc1_dims):
    """Padded LIF membrane state (equivalent of self.lif1.init_leaky() / reset())."""
    b_pad, _ = _batch_layout(batch)
    return jnp.zeros((b_pad, _round_up(fc1_dims, LANE)), jnp.float32)


def critic_forward(states, actions, mem, params):
    """Fused T-step forward.

    states:  (T, B, input_dims)    actions: (T, B, n_actions)
    mem:     padded membrane from init_mem() / a previous call (carried across
             fused calls, updated in place via aliasing)
    returns: (q of shape (T, B, 1), new padded membrane)

    T == 1 is exactly one CriticNetwork.forward(state, action) call.
    Note: padded batch rows of `mem` (rows >= B) accumulate bias-driven values;
    do not reuse the buffer with a different B or inspect those rows.
    """
    T, B, in_dims = states.shape
    n_act = actions.shape[2]
    B_pad, fc1_pad = mem.shape
    K_pad = params["w1"].shape[0]
    q_pad = params["bq"].shape[1]

    exp_B_pad, TB = _batch_layout(B)
    if B_pad != exp_B_pad:
        raise ValueError("mem was initialized for a different batch size")

    # One concat + pad (feature dim -> K_pad lanes, batch -> B_pad rows) for all
    # T steps — amortized over the whole fused call, not per step.
    x = jnp.concatenate([states, actions], axis=2)
    x = jnp.pad(x, ((0, 0), (0, B_pad - B), (0, K_pad - in_dims - n_act)))

    grid = (B_pad // TB, T)

    def whole(arr):   # VMEM-resident weight / bias (constant block index)
        return pl.BlockSpec(arr.shape, lambda i, t: (0, 0))

    q_full, mem_new = pl.pallas_call(
        critic_kernel,
        grid=grid,
        in_specs=[
            pl.BlockSpec((1, TB, K_pad), lambda i, t: (t, i, 0)),     # x (per step)
            pl.BlockSpec((TB, fc1_pad), lambda i, t: (i, 0)),         # mem in (per tile)
            whole(params["w1"]), whole(params["b1"]),
            whole(params["w2"]), whole(params["b2"]),
            whole(params["wq"]), whole(params["bq"]),
        ],
        out_specs=(
            pl.BlockSpec((1, TB, q_pad), lambda i, t: (t, i, 0)),     # q (per step)
            pl.BlockSpec((TB, fc1_pad), lambda i, t: (i, 0)),         # mem (resident over t)
        ),
        out_shape=(
            jax.ShapeDtypeStruct((T, B_pad, q_pad), jnp.float32),
            jax.ShapeDtypeStruct((B_pad, fc1_pad), jnp.float32),
        ),
        input_output_aliases={1: 1},        # membrane carried / updated in place
        compiler_params=pltpu.CompilerParams(
            dimension_semantics=("parallel", "arbitrary")),
    )(x, mem, params["w1"], params["b1"], params["w2"], params["b2"],
      params["wq"], params["bq"])

    return q_full[:, :B, :1], mem_new


# ---------------------------------------------------------------------------
# Params (PyTorch nn.Linear default init), lane-padded
# ---------------------------------------------------------------------------
def init_params(key, input_dims, n_actions, fc1_dims, fc2_dims):
    """uniform(-1/sqrt(fan_in), 1/sqrt(fan_in)) init, lane-padded to 128.

    Padded *input* rows and padded *output* columns are exactly zero, so padded
    feature lanes contribute nothing and padded membrane lanes never spike."""
    K = input_dims + n_actions
    K_pad = _round_up(K, LANE)
    fc1_pad = _round_up(fc1_dims, LANE)
    fc2_pad = _round_up(fc2_dims, LANE)
    q_pad = LANE

    def linear(k, fan_in, fan_out, in_pad, out_pad):
        kw, kb = jax.random.split(k)
        bound = float(fan_in) ** -0.5
        w = jax.random.uniform(kw, (fan_in, fan_out), jnp.float32, -bound, bound)
        b = jax.random.uniform(kb, (1, fan_out), jnp.float32, -bound, bound)
        w = jnp.pad(w, ((0, in_pad - fan_in), (0, out_pad - fan_out)))
        b = jnp.pad(b, ((0, 0), (0, out_pad - fan_out)))
        return w, b

    k1, k2, k3 = jax.random.split(key, 3)
    w1, b1 = linear(k1, K, fc1_dims, K_pad, fc1_pad)
    w2, b2 = linear(k2, fc1_dims, fc2_dims, fc1_pad, fc2_pad)
    wq, bq = linear(k3, fc2_dims, 1, fc2_pad, q_pad)
    return {"w1": w1, "b1": b1, "w2": w2, "b2": b2, "wq": wq, "bq": bq}


# ---------------------------------------------------------------------------
# Pure-JAX reference on logical (unpadded) shapes
# ---------------------------------------------------------------------------
def critic_reference(states, actions, mem0, params, dims):
    input_dims, n_actions, fc1_dims, fc2_dims = dims
    K = input_dims + n_actions
    w1 = params["w1"][:K, :fc1_dims]
    b1 = params["b1"][:, :fc1_dims]
    w2 = params["w2"][:fc1_dims, :fc2_dims]
    b2 = params["b2"][:, :fc2_dims]
    wq = params["wq"][:fc2_dims, :1]
    bq = params["bq"][:, :1]

    qs = []
    mem = mem0
    for t in range(states.shape[0]):
        x = jnp.concatenate([states[t], actions[t]], axis=1)
        z1 = x @ w1 + b1
        reset = (mem > THRESHOLD).astype(jnp.float32)
        mem = BETA * mem + z1 - reset * THRESHOLD
        spk = (mem > THRESHOLD).astype(jnp.float32)
        h2 = jnp.maximum(spk @ w2 + b2, 0.0)
        qs.append(h2 @ wq + bq)
    return jnp.stack(qs), mem


# ---------------------------------------------------------------------------
if __name__ == "__main__":
    T_STEPS = 4
    B = 8
    input_dims = 16
    n_actions = 4
    fc1_dims = 32
    fc2_dims = 32

    key = jax.random.PRNGKey(0)
    kp, ks, ka = jax.random.split(key, 3)

    params = init_params(kp, input_dims, n_actions, fc1_dims, fc2_dims)
    # Scale inputs so some fc1 outputs cross the spiking threshold.
    states = 3.0 * jax.random.normal(ks, (T_STEPS, B, input_dims), jnp.float32)
    actions = 3.0 * jax.random.normal(ka, (T_STEPS, B, n_actions), jnp.float32)

    mem0 = init_mem(B, fc1_dims)                 # self.lif1.init_leaky()

    forward = jax.jit(critic_forward)
    q, mem1 = forward(states, actions, mem0, params)
    jax.block_until_ready((q, mem1))

    q_ref, mem_ref = critic_reference(
        states, actions, jnp.zeros((B, fc1_dims), jnp.float32), params,
        (input_dims, n_actions, fc1_dims, fc2_dims))

    assert q.shape == (T_STEPS, B, 1)
    assert mem1.shape == mem0.shape
    assert jnp.allclose(q, q_ref, atol=1e-4), "q mismatch vs reference"
    assert jnp.allclose(mem1[:B, :fc1_dims], mem_ref, atol=1e-5), "mem mismatch vs reference"
    # Padded membrane lanes must stay exactly zero so padded spikes never fire.
    assert jnp.all(mem1[:B, fc1_dims:] == 0.0), "padded LIF lanes leaked"

    # T == 1 path: exactly one CriticNetwork.forward(state, action) call.
    q1, mem1a = jax.jit(critic_forward)(
        states[:1], actions[:1], init_mem(B, fc1_dims), params)
    jax.block_until_ready((q1, mem1a))
    assert jnp.allclose(q1[0], q_ref[0], atol=1e-4), "single-step q mismatch"

    print("KERNEL_OK")
</pallas_src>

<mosaic_0001>
module attributes {stable_mosaic.version = 11 : i64} {
  func.func @critic_kernel(%arg0: i32, %arg1: i32, %arg2: memref<1x8x128xf32, #tpu.memory_space<vmem>>, %arg3: memref<8x128xf32, #tpu.memory_space<vmem>>, %arg4: memref<128x128xf32, #tpu.memory_space<vmem>>, %arg5: memref<1x128xf32, #tpu.memory_space<vmem>>, %arg6: memref<128x128xf32, #tpu.memory_space<vmem>>, %arg7: memref<1x128xf32, #tpu.memory_space<vmem>>, %arg8: memref<128x128xf32, #tpu.memory_space<vmem>>, %arg9: memref<1x128xf32, #tpu.memory_space<vmem>>, %arg10: memref<1x8x128xf32, #tpu.memory_space<vmem>>, %arg11: memref<8x128xf32, #tpu.memory_space<vmem>>) attributes {dimension_semantics = [#tpu.dimension_semantics<parallel>, #tpu.dimension_semantics<arbitrary>], iteration_bounds = array<i64: 1, 4>, scalar_prefetch = 0 : i64, scratch_operands = 0 : i64, tpu.core_type = #tpu.core_type<tc>, window_params = [{transform_indices = @transform_0, window_bounds = array<i64: 1, 8, 128>}, {transform_indices = @transform_1, window_bounds = array<i64: 8, 128>}, {pipeline_mode = #tpu.pipeline_mode<synchronous>, transform_indices = @transform_2, window_bounds = array<i64: 128, 128>}, {pipeline_mode = #tpu.pipeline_mode<synchronous>, transform_indices = @transform_3, window_bounds = array<i64: 1, 128>}, {pipeline_mode = #tpu.pipeline_mode<synchronous>, transform_indices = @transform_4, window_bounds = array<i64: 128, 128>}, {pipeline_mode = #tpu.pipeline_mode<synchronous>, transform_indices = @transform_5, window_bounds = array<i64: 1, 128>}, {pipeline_mode = #tpu.pipeline_mode<synchronous>, transform_indices = @transform_6, window_bounds = array<i64: 128, 128>}, {pipeline_mode = #tpu.pipeline_mode<synchronous>, transform_indices = @transform_7, window_bounds = array<i64: 1, 128>}, {transform_indices = @transform_8, window_bounds = array<i64: 1, 8, 128>}, {transform_indices = @transform_9, window_bounds = array<i64: 8, 128>}]} {
    %c0_i32 = arith.constant 0 : i32
    %0 = arith.cmpi eq, %arg1, %c0_i32 : i32
    %1 = arith.extui %0 : i1 to i32
    %c0_i32_0 = arith.constant 0 : i32
    %2 = arith.cmpi ne, %1, %c0_i32_0 : i32
    scf.if %2 {
      %c0_29 = arith.constant 0 : index
      %c0_30 = arith.constant 0 : index
      %41 = vector.load %arg3[%c0_29, %c0_30] : memref<8x128xf32, #tpu.memory_space<vmem>>, vector<8x128xf32>
      %c0_31 = arith.constant 0 : index
      %c0_32 = arith.constant 0 : index
      %42 = vector.load %arg11[%c0_31, %c0_32] : memref<8x128xf32, #tpu.memory_space<vmem>>, vector<8x128xf32>
      tpu.vector_store %arg11[%c0_31, %c0_32], %41 {strides = array<i32>} : memref<8x128xf32, #tpu.memory_space<vmem>>, vector<8x128xf32>,
    } else {
    }
    %c0 = arith.constant 0 : index
    %c0_1 = arith.constant 0 : index
    %3 = vector.load %arg11[%c0, %c0_1] : memref<8x128xf32, #tpu.memory_space<vmem>>, vector<8x128xf32>
    %c0_2 = arith.constant 0 : index
    %c0_3 = arith.constant 0 : index
    %c0_4 = arith.constant 0 : index
    %4 = vector.load %arg2[%c0_2, %c0_3, %c0_4] : memref<1x8x128xf32, #tpu.memory_space<vmem>>, vector<1x8x128xf32>
    %5 = vector.shape_cast %4 : vector<1x8x128xf32> to vector<8x128xf32>
    %c0_5 = arith.constant 0 : index
    %c0_6 = arith.constant 0 : index
    %6 = vector.load %arg4[%c0_5, %c0_6] : memref<128x128xf32, #tpu.memory_space<vmem>>, vector<128x128xf32>
    %cst = arith.constant dense<0.000000e+00> : vector<8x128xf32>
    %7 = tpu.matmul %5, %6, %cst {dimension_numbers = #tpu.dot_dimension_numbers<[1], [0], [0], [1], [0, 0, 1, 1], [], []>} : vector<8x128xf32>, vector<128x128xf32>, vector<8x128xf32> -> vector<8x128xf32>
    %c0_7 = arith.constant 0 : index
    %c0_8 = arith.constant 0 : index
    %8 = vector.load %arg5[%c0_7, %c0_8] : memref<1x128xf32, #tpu.memory_space<vmem>>, vector<1x128xf32>
    %9 = vector.broadcast %8 : vector<1x128xf32> to vector<8x128xf32>
    %10 = arith.addf %7, %9 : vector<8x128xf32>
    %cst_9 = arith.constant 1.000000e+00 : f32
    %11 = vector.broadcast %cst_9 : f32 to vector<8x128xf32>
    %12 = arith.cmpf ogt, %3, %11 : vector<8x128xf32>
    %13 = arith.extui %12 : vector<8x128xi1> to vector<8x128xi32>
    %14 = arith.sitofp %13 : vector<8x128xi32> to vector<8x128xf32>
    %cst_10 = arith.constant 0.949999988 : f32
    %15 = vector.broadcast %cst_10 : f32 to vector<8x128xf32>
    %16 = arith.mulf %15, %3 : vector<8x128xf32>
    %17 = arith.addf %16, %10 : vector<8x128xf32>
    %cst_11 = arith.constant 1.000000e+00 : f32
    %18 = vector.broadcast %cst_11 : f32 to vector<8x128xf32>
    %19 = arith.mulf %14, %18 : vector<8x128xf32>
    %20 = arith.subf %17, %19 : vector<8x128xf32>
    %cst_12 = arith.constant 1.000000e+00 : f32
    %21 = vector.broadcast %cst_12 : f32 to vector<8x128xf32>
    %22 = arith.cmpf ogt, %20, %21 : vector<8x128xf32>
    %23 = arith.extui %22 : vector<8x128xi1> to vector<8x128xi32>
    %24 = arith.sitofp %23 : vector<8x128xi32> to vector<8x128xf32>
    %c0_13 = arith.constant 0 : index
    %c0_14 = arith.constant 0 : index
    %25 = vector.load %arg6[%c0_13, %c0_14] : memref<128x128xf32, #tpu.memory_space<vmem>>, vector<128x128xf32>
    %cst_15 = arith.constant dense<0.000000e+00> : vector<8x128xf32>
    %26 = tpu.matmul %24, %25, %cst_15 {dimension_numbers = #tpu.dot_dimension_numbers<[1], [0], [0], [1], [0, 0, 1, 1], [], []>} : vector<8x128xf32>, vector<128x128xf32>, vector<8x128xf32> -> vector<8x128xf32>
    %c0_16 = arith.constant 0 : index
    %c0_17 = arith.constant 0 : index
    %27 = vector.load %arg7[%c0_16, %c0_17] : memref<1x128xf32, #tpu.memory_space<vmem>>, vector<1x128xf32>
    %28 = vector.broadcast %27 : vector<1x128xf32> to vector<8x128xf32>
    %29 = arith.addf %26, %28 : vector<8x128xf32>
    %cst_18 = arith.constant 0.000000e+00 : f32
    %30 = vector.broadcast %cst_18 : f32 to vector<8x128xf32>
    %31 = arith.maximumf %29, %30 : vector<8x128xf32>
    %c0_19 = arith.constant 0 : index
    %c0_20 = arith.constant 0 : index
    %32 = vector.load %arg8[%c0_19, %c0_20] : memref<128x128xf32, #tpu.memory_space<vmem>>, vector<128x128xf32>
    %cst_21 = arith.constant dense<0.000000e+00> : vector<8x128xf32>
    %33 = tpu.matmul %31, %32, %cst_21 {dimension_numbers = #tpu.dot_dimension_numbers<[1], [0], [0], [1], [0, 0, 1, 1], [], []>} : vector<8x128xf32>, vector<128x128xf32>, vector<8x128xf32> -> vector<8x128xf32>
    %c0_22 = arith.constant 0 : index
    %c0_23 = arith.constant 0 : index
    %34 = vector.load %arg9[%c0_22, %c0_23] : memref<1x128xf32, #tpu.memory_space<vmem>>, vector<1x128xf32>
    %35 = vector.broadcast %34 : vector<1x128xf32> to vector<8x128xf32>
    %36 = arith.addf %33, %35 : vector<8x128xf32>
    %c0_24 = arith.constant 0 : index
    %c0_25 = arith.constant 0 : index
    %c0_26 = arith.constant 0 : index
    %37 = vector.load %arg10[%c0_24, %c0_25, %c0_26] : memref<1x8x128xf32, #tpu.memory_space<vmem>>, vector<1x8x128xf32>
    %38 = vector.shape_cast %37 : vector<1x8x128xf32> to vector<8x128xf32>
    %39 = vector.shape_cast %36 : vector<8x128xf32> to vector<1x8x128xf32>
    tpu.vector_store %arg10[%c0_24, %c0_25, %c0_26], %39 {strides = array<i32>} : memref<1x8x128xf32, #tpu.memory_space<vmem>>, vector<1x8x128xf32>,
    %c0_27 = arith.constant 0 : index
    %c0_28 = arith.constant 0 : index
    %40 = vector.load %arg11[%c0_27, %c0_28] : memref<8x128xf32, #tpu.memory_space<vmem>>, vector<8x128xf32>
    tpu.vector_store %arg11[%c0_27, %c0_28], %20 {strides = array<i32>} : memref<8x128xf32, #tpu.memory_space<vmem>>, vector<8x128xf32>,
    return
  }
  func.func @transform_0(%arg0: i32, %arg1: i32) -> (i32, i32, i32) {
    %c0_i32 = arith.constant 0 : i32
    %c0_i32_0 = arith.constant 0 : i32
    return %arg1, %arg0, %c0_i32 : i32, i32, i32
  }
  func.func @transform_1(%arg0: i32, %arg1: i32) -> (i32, i32) {
    %c0_i32 = arith.constant 0 : i32
    %c0_i32_0 = arith.constant 0 : i32
    return %arg0, %c0_i32 : i32, i32
  }
  func.func @transform_2(%arg0: i32, %arg1: i32) -> (i32, i32) {
    %c0_i32 = arith.constant 0 : i32
    %c0_i32_0 = arith.constant 0 : i32
    %c0_i32_1 = arith.constant 0 : i32
    return %c0_i32, %c0_i32_0 : i32, i32
  }
  func.func @transform_3(%arg0: i32, %arg1: i32) -> (i32, i32) {
    %c0_i32 = arith.constant 0 : i32
    %c0_i32_0 = arith.constant 0 : i32
    %c0_i32_1 = arith.constant 0 : i32
    return %c0_i32, %c0_i32_0 : i32, i32
  }
  func.func @transform_4(%arg0: i32, %arg1: i32) -> (i32, i32) {
    %c0_i32 = arith.constant 0 : i32
    %c0_i32_0 = arith.constant 0 : i32
    %c0_i32_1 = arith.constant 0 : i32
    return %c0_i32, %c0_i32_0 : i32, i32
  }
  func.func @transform_5(%arg0: i32, %arg1: i32) -> (i32, i32) {
    %c0_i32 = arith.constant 0 : i32
    %c0_i32_0 = arith.constant 0 : i32
    %c0_i32_1 = arith.constant 0 : i32
    return %c0_i32, %c0_i32_0 : i32, i32
  }
  func.func @transform_6(%arg0: i32, %arg1: i32) -> (i32, i32) {
    %c0_i32 = arith.constant 0 : i32
    %c0_i32_0 = arith.constant 0 : i32
    %c0_i32_1 = arith.constant 0 : i32
    return %c0_i32, %c0_i32_0 : i32, i32
  }
  func.func @transform_7(%arg0: i32, %arg1: i32) -> (i32, i32) {
    %c0_i32 = arith.constant 0 : i32
    %c0_i32_0 = arith.constant 0 : i32
    %c0_i32_1 = arith.constant 0 : i32
    return %c0_i32, %c0_i32_0 : i32, i32
  }
  func.func @transform_8(%arg0: i32, %arg1: i32) -> (i32, i32, i32) {
    %c0_i32 = arith.constant 0 : i32
    %c0_i32_0 = arith.constant 0 : i32
    return %arg1, %arg0, %c0_i32 : i32, i32, i32
  }
  func.func @transform_9(%arg0: i32, %arg1: i32) -> (i32, i32) {
    %c0_i32 = arith.constant 0 : i32
    %c0_i32_0 = arith.constant 0 : i32
    return %arg0, %c0_i32 : i32, i32
  }
}

</mosaic_0001>

<bundles_post_ra>
// kernel: critic_forward.1
= control target key start
LH: loop header
LB: loop body
LE: loop exit
PB: predicated region body
PF: predicated region fallthrough
CT: control target
= control target key end

     0   :  { %15 = vsyncpa [#allocation3], 0  ;;  %s1606_s0 = inlined_call_operand.vmem [shape: f32[4,8,128], index: 0, kind: input, shape index: {}]   ;;  %s1607_s1 = inlined_call_operand.vmem [shape: f32[8,128], index: 1, kind: input, shape index: {}, may-alias: {1,9}]   ;;  %s1608_s2 = inlined_call_operand.vmem [shape: f32[128,128], index: 2, kind: input, shape index: {}]   ;;  %s1609_s3 = inlined_call_operand.vmem [shape: f32[1,128], index: 3, kind: input, shape index: {}]   ;;  %s1610_s4 = inlined_call_operand.hbm [shape: f32[128,128], index: 4, kind: input, shape index: {}]   ;;  %s1611_s5 = inlined_call_operand.vmem [shape: f32[1,128], index: 5, kind: input, shape index: {}]   ;;  %s1612_s6 = inlined_call_operand.hbm [shape: f32[128,128], index: 6, kind: input, shape index: {}]   ;;  %s1613_s7 = inlined_call_operand.hbm [shape: f32[1,128], index: 7, kind: input, shape index: {}]   ;;  %s1614_s8 = inlined_call_operand.vmem [shape: f32[4,8,128], index: 8, kind: output, shape index: {0}]   ;;  %s1615_s9 = inlined_call_operand.vmem [shape: f32[8,128], index: 9, kind: output, shape index: {1}, may-alias: {1,9}]  }
   0x1   :  { %16 = vsyncpa [#allocation5], 0  ;;  %s1365_s30 = smov 0   ;;  %s1367_s10 = smov 0  }
   0x2   :  { %s1369_s11 = smov 0  }
   0x3 LB: > { %1620 = sst [smem:[#allocation9_spill]] %s1300_s10  ;;  %s877_s12 = sadd.s32 4294967295, %s1304_s11   ;;  %s1304_s11 = sphi %s1369_s11, %s22_s11   ;;  %s1300_s10 = sphi %s1367_s10, %s1629_s10   ;;  %s1296_s30 = sphi %s1365_s30, %s1628_s30  }
   0x4   : > { %p879_p0 = scmp.ge.s32.totalorder %s1304_s11, 1  ;;  %p273_p1 = scmp.lt.s32.totalorder %s1304_s11, 5 }
   0x5   : > { %p1383_p2 = scmp.eq.s32.totalorder %s877_s12, 0  ;;  %s1306_s15 = smov [#allocation4]  }
   0x6   : > { %p1387_p3 = pnand %p879_p0, %p273_p1  ;;  %s314_s16 = sshll.u32 %s1306_s15, 4  ;;  %s1391_s16 = int_to_ptr.vmem [resolvable:$true] %s314_s16 }
   0x7   : > { %s1621_s13 = scalar_select %p1383_p2, 1, 0 }
   0x8   : > { %s1622_s14 = scalar_select %p1387_p3, 1, 0 }
   0x9   : > { %p1141_p4 = pneg %p1387_p3  ;;  %s31_s18 = sadd.s32 1, %s1300_s10 }
   0xa   : > { %p1402_p6 = scmp.ge.s32.totalorder %s31_s18, 4  ;;  %s1307_s20 = smov [#allocation2]  }
   0xb   : > { %p1397_p5 = pnand %p1383_p2, %p1141_p4  ;;  %s298_s21 = sshll.u32 %s1307_s20, 4  ;;  %s299_s21 = int_to_ptr.vmem [resolvable:$true] %s298_s21 }
   0xc   : > { %s1190_s24 = scalar_lea.hbm %s1612_s6, 2048 }
   0xd   : > { %p1191_p7 = scmp.ne.s32.totalorder %s1612_s6, %s1190_s24  ;;  %p1414_p8 = pneg %p1397_p5 }
   0xe   : > { %p1197_p11 = scmp.lt.u32.totalorder %s1190_s24, %s1612_s6 }
   0xf   : > { %p1193_p9 = pnand %p1414_p8, %p1191_p7 }
  0x11   : > { %p1194_p10 = pneg %p1193_p9 }
  0x13   : > { %p1199_p12 = pnand %p1197_p11, %p1194_p10 }
  0x15   : > { %1202 = shalt.err (!%p1199_p12)
}
  0x16   : > { %s1203_s12 = scalar_lea.vmem %s1391_s16, 2048  ;;  %p1211_p4 = scmp.lt.s32.totalorder %s1391_s16, %s1391_s16 }
  0x17   : > { %p1204_p13 = scmp.ne.s32.totalorder %s1391_s16, %s1203_s12  ;;  %p1212_p2 = scmp.lt.s32.totalorder %s1203_s12, %s1203_s12 }
  0x19   : > { %p1206_p0 = pnand %p1204_p13, %p1414_p8  ;;  %p1213_p7 = por %p1212_p2, %p1211_p4 }
  0x1b   : > { %p1207_p1 = pneg %p1206_p0 }
  0x1d   : > { %p1214_p9 = pnand %p1213_p7, %p1207_p1 }
  0x1f   : > { %1217 = shalt.err (!%p1214_p9)
}
  0x20   : > { %s1308_s15 = smov 128   ;;  %s1309_s20 = smov 8  }
  0x21   : > { %1147 = dma.hbm_to_vmem [thread:$0]  (!%p1397_p5), %s1612_s6, 2048, %s1391_s16, [#allocation5], %s1308_s15, %s1308_s15, %s1309_s20  }
  0x22   : > { %s1631_s18 = smov (%p1402_p6, %s31_s18), 0  ;;  %s1218_s26 = scalar_lea.hbm %s1610_s4, 2048 }
  0x23   : > { %p1219_p2 = scmp.ne.s32.totalorder %s1610_s4, %s1218_s26  ;;  %p1225_p12 = scmp.lt.u32.totalorder %s1218_s26, %s1610_s4 }
  0x25   : > { %p1221_p10 = pnand %p1219_p2, %p1414_p8 }
  0x27   : > { %p1222_p11 = pneg %p1221_p10 }
  0x29   : > { %p1227_p13 = pnand %p1225_p12, %p1222_p11 }
  0x2b   : > { %1230 = shalt.err (!%p1227_p13)
}
  0x2c   : > { %s1231_s16 = scalar_lea.vmem %s299_s21, 2048  ;;  %p1239_p4 = scmp.lt.s32.totalorder %s299_s21, %s299_s21 }
  0x2d   : > { %p1232_p6 = scmp.ne.s32.totalorder %s299_s21, %s1231_s16  ;;  %p1240_p7 = scmp.lt.s32.totalorder %s1231_s16, %s1231_s16 }
  0x2f   : > { %p1234_p0 = pnand %p1232_p6, %p1414_p8  ;;  %p1241_p9 = por %p1240_p7, %p1239_p4 }
  0x31   : > { %p1235_p1 = pneg %p1234_p0 }
  0x33   : > { %p1242_p3 = pnand %p1241_p9, %p1235_p1 }
  0x35   : > { %1245 = shalt.err (!%p1242_p3)
}
  0x36   : > { %1144 = dma.hbm_to_vmem [thread:$0]  (!%p1397_p5), %s1610_s4, 2048, %s299_s21, [#allocation3], %s1308_s15, %s1308_s15, %s1309_s20  }
  0x37   : > { %s1310_s10 = smov [#allocation6]   ;;  %s1246_s26 = scalar_lea.hbm %s1613_s7, 16 }
  0x38   : > { %s328_s23 = sshll.u32 %s1310_s10, 4  ;;  %p1247_p2 = scmp.ne.s32.totalorder %s1613_s7, %s1246_s26  ;;  %s329_s23 = int_to_ptr.vmem [resolvable:$true] %s328_s23 }
  0x39   : > { %p1253_p11 = scmp.lt.u32.totalorder %s1246_s26, %s1613_s7 }
  0x3a   : > { %p1249_p3 = pnand %p1247_p2, %p1414_p8 }
  0x3c   : > { %p1250_p10 = pneg %p1249_p3 }
  0x3e   : > { %p1255_p12 = pnand %p1253_p11, %p1250_p10 }
  0x40   : > { %1258 = shalt.err (!%p1255_p12)
}
  0x41   : > { %s1259_s21 = scalar_lea.vmem %s329_s23, 16  ;;  %s1266_s15 = scalar_lea.vmem %s329_s23, 32 }
  0x42   : > { %p1260_p13 = scmp.ne.s32.totalorder %s329_s23, %s1259_s21  ;;  %p1267_p1 = scmp.lt.s32.totalorder %s329_s23, %s329_s23 }
  0x43   : > { %p1268_p4 = scmp.lt.s32.totalorder %s1266_s15, %s1259_s21 }
  0x44   : > { %p1262_p6 = pnand %p1260_p13, %p1414_p8 }
  0x45   : > { %p1269_p7 = por %p1268_p4, %p1267_p1 }
  0x46   : > { %p1263_p0 = pneg %p1262_p6 }
  0x48   : > { %p1270_p9 = pnand %p1269_p7, %p1263_p0 }
  0x4a   : > { %1273 = shalt.err (!%p1270_p9)
}
  0x4b   : > { %1150 = dma.hbm_to_vmem [thread:$0]  (!%p1397_p5), %s1613_s7, 16, %s329_s23, [#allocation5]  }
  0x4c   : > { %p1626_p2 = scmp.ne.s32.totalorder %s1622_s14, 0 }
  0x4d   : > { %p1627_p3 = scmp.ne.s32.totalorder (!%p1626_p2), %s1621_s13, 0 }
  0x4e   : > { %351 = sbr.rel (%p1626_p2) target bundleno = 782 (0x30e), region = 52 }
  0x55   : > { %1287 = dma.done.wait (%p1627_p3), [#allocation3], 2048  }
  0x56   : > { %1289 = vsyncadd (%p1627_p3), [#allocation3], 4294965248 }
  0x57   : > { %1291 = dma.done.wait (%p1627_p3), [#allocation5], 2064  }
  0x58   : > { %1293 = vsyncadd (%p1627_p3), [#allocation5], 4294965232  ;;  %p407_p8 = scmp.lt.s32.totalorder %s1296_s30, 3  ;;  %p891_p5 = scmp.ne.s32.totalorder %s1296_s30, 0 }
  0x59   : > { %v433_v0 = vld [vmem:[%s1607_s1] sm:$0xff] (!%p891_p5) }
  0x5a   : > { %s408_s17 = scalar_select %p407_p8, %s1296_s30, 3 }
  0x5b   : > { %432 = sbr.rel (%p891_p5) target bundleno = 98 (0x62), region = 68  ;;  %434 = vst [vmem:[%s1615_s9] sm:$0xff] (!%p891_p5), %v433_v0 }
  0x5c   : > { %s889_s27 = sshll.u32 %s408_s17, 3 }
  0x5d   : > { %s1490_s10 = scalar_lea.vmem %s1606_s0, %s889_s27  ;;  %s1495_s25 = scalar_lea.vmem %s1614_s8, %s889_s27 }
  0x62 PF: > { %v437_v1 = vld [vmem:[%s1608_s2] sm:$0xff]  ;;  %v438_v2 = vld [vmem:[%s1608_s2 + $0x8] sm:$0xff]  ;;  %v439_v3 = vld [vmem:[%s1608_s2 + $0x10] sm:$0xff]  ;;  %v1311_v4 = vmov 0.0|0.0   ;;  %vm1312_vm0 = vmmov 0   ;;  %v1313_v7 = vmov 0.0  }
  0x63   : > { %1057 = vmatprep.subr.bf16.mxu0 %v1311_v4  ;;  %v1058_v5 = vpack.c.bf16 %v438_v2, %v437_v1  ;;  %v440_v6 = vld [vmem:[%s1608_s2 + $0x18] sm:$0xff]  ;;  %984 = vmatprep.mubr.msk.f32.mxu0 %vm1312_vm0, %v1313_v7  ;;  %v441_v9 = vld [vmem:[%s1608_s2 + $0x20] sm:$0xff]  ;;  %v442_v10 = vld [vmem:[%s1608_s2 + $0x28] sm:$0xff] }
  0x64   : > { %1081 = vmatprep.subr.bf16.mxu1 %v1311_v4  ;;  %1019 = vmatprep.mubr.msk.f32.mxu1 %vm1312_vm0, %v1313_v7  ;;  %v1061_v8 = vpack.c.bf16 %v440_v6, %v439_v3  ;;  %v539_v11 = vld [vmem:[#allocation2] sm:$0xff]  ;;  %v540_v12 = vld [vmem:[#allocation2 + $0x8] sm:$0xff]  ;;  %v541_v13 = vld [vmem:[#allocation2 + $0x10] sm:$0xff]  ;;  %v1064_v15 = vpack.c.bf16 %v442_v10, %v441_v9 }
  0x65   : > { %1059 = vmatpush3.bf16.msra.mxu0 %v1058_v5  ;;  %v542_v14 = vld [vmem:[#allocation2 + $0x18] sm:$0xff]  ;;  %v1082_v16 = vpack.c.bf16 %v540_v12, %v539_v11  ;;  %v443_v17 = vld [vmem:[%s1608_s2 + $0x30] sm:$0xff]  ;;  %v543_v20 = vld [vmem:[#allocation2 + $0x20] sm:$0xff] }
  0x66   : > { %1060 = vmatprep.subr.bf16.mxu0 %v1311_v4  ;;  %v444_v18 = vld [vmem:[%s1608_s2 + $0x38] sm:$0xff]  ;;  %v1085_v19 = vpack.c.bf16 %v542_v14, %v541_v13  ;;  %v544_v21 = vld [vmem:[#allocation2 + $0x28] sm:$0xff]  ;;  %v445_v23 = vld [vmem:[%s1608_s2 + $0x40] sm:$0xff] }
  0x67   : > { %1083 = vmatpush3.bf16.msra.mxu1 %v1082_v16  ;;  %v1067_v22 = vpack.c.bf16 %v444_v18, %v443_v17  ;;  %v446_v24 = vld [vmem:[%s1608_s2 + $0x48] sm:$0xff]  ;;  %v1088_v25 = vpack.c.bf16 %v544_v21, %v543_v20  ;;  %v545_v26 = vld [vmem:[#allocation2 + $0x30] sm:$0xff]  ;;  %v546_v27 = vld [vmem:[#allocation2 + $0x38] sm:$0xff] }
  0x68   : > { %1084 = vmatprep.subr.bf16.mxu1 %v1311_v4  ;;  %v1070_v28 = vpack.c.bf16 %v446_v24, %v445_v23  ;;  %v447_v29 = vld [vmem:[%s1608_s2 + $0x50] sm:$0xff]  ;;  %v448_v30 = vld [vmem:[%s1608_s2 + $0x58] sm:$0xff]  ;;  %v1091_v31 = vpack.c.bf16 %v546_v27, %v545_v26  ;;  %v547_v32 = vld [vmem:[#allocation2 + $0x40] sm:$0xff] }
  0x69   : > { %1062 = vmatpush3.bf16.msra.mxu0 %v1061_v8  ;;  %v548_v33 = vld [vmem:[#allocation2 + $0x48] sm:$0xff]  ;;  %v1073_v34 = vpack.c.bf16 %v448_v30, %v447_v29  ;;  %v449_v35 = vld [vmem:[%s1608_s2 + $0x60] sm:$0xff]  ;;  %v549_v38 = vld [vmem:[#allocation2 + $0x50] sm:$0xff] }
  0x6a   : > { %1063 = vmatprep.subr.bf16.mxu0 %v1311_v4  ;;  %v450_v36 = vld [vmem:[%s1608_s2 + $0x68] sm:$0xff]  ;;  %v1094_v37 = vpack.c.bf16 %v548_v33, %v547_v32  ;;  %v550_v39 = vld [vmem:[#allocation2 + $0x58] sm:$0xff]  ;;  %v451_v41 = vld [vmem:[%s1608_s2 + $0x70] sm:$0xff] }
  0x6b   : > { %1086 = vmatpush3.bf16.msra.mxu1 %v1085_v19  ;;  %v1076_v40 = vpack.c.bf16 %v450_v36, %v449_v35  ;;  %v452_v42 = vld [vmem:[%s1608_s2 + $0x78] sm:$0xff]  ;;  %v1097_v43 = vpack.c.bf16 %v550_v39, %v549_v38  ;;  %v436_v45 = vld [vmem:[%s1490_s10] sm:$0xff]  ;;  %v552_v47 = vld [vmem:[#allocation2 + $0x68] sm:$0xff] }
  0x6c   : > { %1087 = vmatprep.subr.bf16.mxu1 %v1311_v4  ;;  %v1079_v44 = vpack.c.bf16 %v452_v42, %v451_v41  ;;  %v551_v46 = vld [vmem:[#allocation2 + $0x60] sm:$0xff]  ;;  %v553_v49 = vld [vmem:[#allocation2 + $0x70] sm:$0xff]  ;;  %v554_v50 = vld [vmem:[#allocation2 + $0x78] sm:$0xff] }
  0x6d   : > { %1065 = vmatpush3.bf16.msra.mxu0 %v1064_v15  ;;  %v1100_v48 = vpack.c.bf16 %v552_v47, %v551_v46  ;;  %v1103_v51 = vpack.c.bf16 %v554_v50, %v553_v49  ;;  %v633_v52 = vld [vmem:[#allocation4] sm:$0xff]  ;;  %v634_v53 = vld [vmem:[#allocation4 + $0x8] sm:$0xff]  ;;  %v635_v54 = vld [vmem:[#allocation4 + $0x10] sm:$0xff] }
  0x6e   : > { %1066 = vmatprep.subr.bf16.mxu0 %v1311_v4  ;;  %v1106_v55 = vpack.c.bf16 %v634_v53, %v633_v52  ;;  %v636_v56 = vld [vmem:[#allocation4 + $0x18] sm:$0xff]  ;;  %v637_v58 = vld [vmem:[#allocation4 + $0x20] sm:$0xff]  ;;  %v638_v59 = vld [vmem:[#allocation4 + $0x28] sm:$0xff] }
  0x6f   : > { %1089 = vmatpush3.bf16.msra.mxu1 %v1088_v25  ;;  %v1109_v57 = vpack.c.bf16 %v636_v56, %v635_v54  ;;  %v1112_v60 = vpack.c.bf16 %v638_v59, %v637_v58  ;;  %v639_v61 = vld [vmem:[#allocation4 + $0x30] sm:$0xff]  ;;  %v640_v62 = vld [vmem:[#allocation4 + $0x38] sm:$0xff]  ;;  %v641_v0 = vld [vmem:[#allocation4 + $0x40] sm:$0xff] }
  0x70   : > { %1090 = vmatprep.subr.bf16.mxu1 %v1311_v4  ;;  %v1115_v63 = vpack.c.bf16 %v640_v62, %v639_v61  ;;  %v642_v1 = vld [vmem:[#allocation4 + $0x48] sm:$0xff]  ;;  %v643_v3 = vld [vmem:[#allocation4 + $0x50] sm:$0xff]  ;;  %v644_v5 = vld [vmem:[#allocation4 + $0x58] sm:$0xff] }
  0x71   : > { %1068 = vmatpush3.bf16.msra.mxu0 %v1067_v22  ;;  %v1118_v2 = vpack.c.bf16 %v642_v1, %v641_v0  ;;  %v1121_v6 = vpack.c.bf16 %v644_v5, %v643_v3  ;;  %v645_v8 = vld [vmem:[#allocation4 + $0x60] sm:$0xff]  ;;  %v646_v9 = vld [vmem:[#allocation4 + $0x68] sm:$0xff]  ;;  %v647_v20 = vld [vmem:[#allocation4 + $0x70] sm:$0xff] }
  0x72   : > { %1069 = vmatprep.subr.bf16.mxu0 %v1311_v4  ;;  %v1124_v10 = vpack.c.bf16 %v646_v9, %v645_v8  ;;  %v435_v11 = vld [vmem:[%s1615_s9] sm:$0xff]  ;;  %v648_v21 = vld [vmem:[#allocation4 + $0x78] sm:$0xff] }
  0x73   : > { %1092 = vmatpush3.bf16.msra.mxu1 %v1091_v31  ;;  %v892_v12 = vld [vmem:[%s1609_s3] ss:$0 sm:$0xff]  ;;  %vm530_vm1 = vcmp.gt.f32.partialorder %v435_v11, 1.0  ;;  %v533_v13 = vmul.f32 0.95, %v435_v11  ;;  %v1127_v22 = vpack.c.bf16 %v648_v21, %v647_v20 }
  0x74   : > { %1093 = vmatprep.subr.bf16.mxu1 %v1311_v4  ;;  %v893_v17 = vsel %vm530_vm1, 1.0, %v1313_v7  ;;  %v895_v23 = vld [vmem:[%s1611_s5] ss:$0 sm:$0xff] }
  0x75   : > { %1071 = vmatpush3.bf16.msra.mxu0 %v1070_v28  ;;  %v897_v27 = vld [vmem:[#allocation6] ss:$0 sm:$0xff] }
  0x76   : > { %1072 = vmatprep.subr.bf16.mxu0 %v1311_v4 }
  0x77   : > { %1095 = vmatpush3.bf16.msra.mxu1 %v1094_v37 }
  0x78   : > { %1096 = vmatprep.subr.bf16.mxu1 %v1311_v4 }
  0x79   : > { %1074 = vmatpush3.bf16.msra.mxu0 %v1073_v34 }
  0x7a   : > { %1075 = vmatprep.subr.bf16.mxu0 %v1311_v4 }
  0x7b   : > { %1098 = vmatpush3.bf16.msra.mxu1 %v1097_v43 }
  0x7c   : > { %1099 = vmatprep.subr.bf16.mxu1 %v1311_v4 }
  0x7d   : > { %1077 = vmatpush3.bf16.msra.mxu0 %v1076_v40 }
  0x7e   : > { %1078 = vmatprep.subr.bf16.mxu0 %v1311_v4 }
  0x7f   : > { %1101 = vmatpush3.bf16.msra.mxu1 %v1100_v48 }
  0x80   : > { %1102 = vmatprep.subr.bf16.mxu1 %v1311_v4 }
  0x81   : > { %1080 = vmatpush3.bf16.msra.mxu0 %v1079_v44 }
  0x82   : > { %1105 = vmatprep.subr.bf16.mxu0 %v1311_v4 }
  0x83   : > { %1104 = vmatpush3.bf16.msra.mxu1 %v1103_v51 }
  0x84   : > { %985 = vmatmul.mubr.f32.vlgmr.msra.gmra.mrb[0].mxu0 %v436_v45 }
  0x85   : > { %1054 = vmatprep.mubr.msk.f32.mxu0 %vm1312_vm0, %v1313_v7  ;;  %1107 = vmatpush3.bf16.msra.mxu0 %v1106_v55 }
  0x86   : > { %1108 = vmatprep.subr.bf16.mxu0 %v1311_v4 }
  0x89   : > { %1110 = vmatpush3.bf16.msra.mxu0 %v1109_v57 }
  0x8a   : > { %1111 = vmatprep.subr.bf16.mxu0 %v1311_v4 }
  0x8d   : > { %1113 = vmatpush3.bf16.msra.mxu0 %v1112_v60 }
  0x8e   : > { %1114 = vmatprep.subr.bf16.mxu0 %v1311_v4 }
  0x91   : > { %1116 = vmatpush3.bf16.msra.mxu0 %v1115_v63 }
  0x92   : > { %1117 = vmatprep.subr.bf16.mxu0 %v1311_v4 }
  0x95   : > { %1119 = vmatpush3.bf16.msra.mxu0 %v1118_v2 }
  0x96   : > { %1120 = vmatprep.subr.bf16.mxu0 %v1311_v4 }
  0x99   : > { %1122 = vmatpush3.bf16.msra.mxu0 %v1121_v6 }
  0x9a   : > { %1123 = vmatprep.subr.bf16.mxu0 %v1311_v4 }
  0x9d   : > { %1125 = vmatpush3.bf16.msra.mxu0 %v1124_v10 }
  0x9e   : > { %1126 = vmatprep.subr.bf16.mxu0 %v1311_v4  ;;  %v1314_v4 = vmov 1.0  }
  0xa1   : > { %1128 = vmatpush3.bf16.msra.mxu0 %v1127_v22 }
 0x157   : > { %v526_v14 = vpop.f32.mrb[0].mxu0 }
 0x158   : > { %v527_v15 = vadd.f32 %v892_v12, %v526_v14  ;;  %v986_v16 = vpop.f32.mrb[1].mxu0 }
 0x15a   : > { %v534_v18 = vadd.f32 %v533_v13, %v527_v15 }
 0x15c   : > { %v535_v19 = vsub.f32 %v534_v18, %v893_v17 }
 0x15e   : > { %727 = vst [vmem:[%s1615_s9] sm:$0xff] %v535_v19  ;;  %vm536_vm2 = vcmp.gt.f32.partialorder %v535_v19, 1.0 }
 0x15f   : > { %1020 = vmatmul.mubr.msk.f32.vlgmr.msra.gmra.mrb[0].mxu1 %vm536_vm2, %v1314_v4 }
 0x232   : > { %v628_v24 = vpop.f32.mrb[0].mxu1 }
 0x233   : > { %v629_v7 = vadd.f32 %v895_v23, %v628_v24  ;;  %v1021_v25 = vpop.f32.mrb[1].mxu1 }
 0x235   : > { %v632_v26 = vmax.f32 %v629_v7, 0.0 }
 0x237   : > { %1055 = vmatmul.mubr.f32.vlgmr.msra.gmra.mrb[2].mxu0 %v632_v26 }
 0x30a   : > { %v722_v28 = vpop.f32.mrb[2].mxu0 }
 0x30b   : > { %v723_v29 = vadd.f32 %v897_v27, %v722_v28  ;;  %v1056_v30 = vpop.f32.mrb[3].mxu0 }
 0x30d   : > { %726 = vst [vmem:[%s1495_s25] sm:$0xff] %v723_v29 }
 0x30e PF: > { %s22_s11 = sadd.s32 1, %s1304_s11   ;;  %s1628_s30 = sld [smem:[#allocation9_spill]] }
 0x30f   : > { %p19_p10 = scmp.ge.s32.totalorder %s22_s11, 6   ;;  %s1629_s10 = smov %s1631_s18 }
 0x311   :  { %21 = sbr.rel (!%p19_p10) target bundleno = 3 (0x3), region = 114 }
 0x318   :  { %767 = vsyncpa [#allocation3], 1 }
 0x319   :  { %769 = vsyncpa [#allocation3 + $0x1], 1 }
 0x31a   :  { %770 = vsyncpa [#allocation5], 1 }

</bundles_post_ra>
